<compile_context>
chip_gen: v7x
topology: tpu7x:2x2x1
jax: 0.10.0
libtpu: 0.0.40
codegen_flags: <defaults>
</compile_context>

<pallas_src>
import jax
import jax.numpy as jnp
from jax.experimental import pallas as pl
from jax.experimental.pallas import tpu as pltpu


def _round_up(n, m):
    return ((n + m - 1) // m) * m


def policy_net_kernel(x_ref, w1_ref, b1_ref, w2_ref, b2_ref, o_ref):
    # linear1: (TB, D_in) f32 -> bf16  @  (D_in, H_pad) bf16, f32 accumulate.
    x = x_ref[...].astype(jnp.bfloat16)
    h = jnp.dot(x, w1_ref[...], preferred_element_type=jnp.float32)
    h = jnp.maximum(h + b1_ref[...], 0.0)            # bias + ReLU in f32

    # linear2: (TB, H_pad) @ (H_pad, DO_pad), f32 accumulate.
    logits = jnp.dot(h.astype(jnp.bfloat16), w2_ref[...],
                     preferred_element_type=jnp.float32)
    logits = logits + b2_ref[...]                    # padded lanes get -1e30

    # Numerically stable softmax over the lane-dense (128-wide) last axis.
    m = jnp.max(logits, axis=-1, keepdims=True)
    e = jnp.exp(logits - m)
    denom = jnp.sum(e, axis=-1, keepdims=True)
    inv = pl.reciprocal(denom, approx=False)         # exact; EUP slot
    o_ref[...] = (e * inv).astype(o_ref.dtype)


def policy_net_forward(x, w1, b1, w2, b2, *, block_b=512):
    """x: (B, D_in) f32; w1: (H, D_in); b1: (H,); w2: (D_out, H); b2: (D_out,).

    Weights/biases follow the PyTorch nn.Linear convention; the wrapper does
    all layout plumbing (transpose / pad / cast) outside the kernel.
    """
    B, d_in = x.shape
    H = w1.shape[0]
    d_out = w2.shape[0]

    h_pad = _round_up(H, 128)        # 200 -> 256: exact (8,128)/MXU alignment
    do_pad = _round_up(d_out, 128)   # 3 -> 128: lane-dense output stores

    # Wrapper-side layout plumbing: transpose to (in, out), zero-pad, cast.
    w1_t = jnp.zeros((d_in, h_pad), jnp.bfloat16)
    w1_t = w1_t.at[:, :H].set(w1.T.astype(jnp.bfloat16))
    b1_row = jnp.zeros((1, h_pad), jnp.float32).at[:, :H].set(b1)

    w2_t = jnp.zeros((h_pad, do_pad), jnp.bfloat16)
    w2_t = w2_t.at[:H, :d_out].set(w2.T.astype(jnp.bfloat16))
    # Padded output lanes get a very negative bias -> exp() underflows to 0.
    b2_row = jnp.full((1, do_pad), -1e30, jnp.float32).at[:, :d_out].set(b2)

    # Batch tiling: largest sublane-aligned row tile up to block_b.
    # (For the real Pong case, D_in=6400: at f32 x-tiles drop block_b to 256
    #  or raise vmem_limit_bytes on v7x's 32 MiB scoped default.)
    if B <= block_b:
        tb = B if B < 8 else _round_up(B, 8)
    else:
        tb = block_b
    b_pad = _round_up(B, tb)
    x_p = x if b_pad == B else jnp.pad(x, ((0, b_pad - B), (0, 0)))
    grid = (b_pad // tb,)

    out = pl.pallas_call(
        policy_net_kernel,
        out_shape=jax.ShapeDtypeStruct((b_pad, do_pad), jnp.float32),
        grid_spec=pltpu.PrefetchScalarGridSpec(
            num_scalar_prefetch=0,
            grid=grid,
            in_specs=[
                pl.BlockSpec((tb, d_in), lambda i: (i, 0)),        # x row tile
                pl.BlockSpec((d_in, h_pad), lambda i: (0, 0)),     # w1 (resident)
                pl.BlockSpec((1, h_pad), lambda i: (0, 0)),        # b1 (resident)
                pl.BlockSpec((h_pad, do_pad), lambda i: (0, 0)),   # w2 (resident)
                pl.BlockSpec((1, do_pad), lambda i: (0, 0)),       # b2 (resident)
            ],
            out_specs=pl.BlockSpec((tb, do_pad), lambda i: (i, 0)),
        ),
        compiler_params=pltpu.CompilerParams(
            # Batch axis is embarrassingly parallel -> megacore / 2-TC sharding.
            dimension_semantics=("parallel",),
        ),
    )(x_p, w1_t, b1_row, w2_t, b2_row)

    return out[:B, :d_out]


def init_params(key, input_dim, output_dim, hidden=200):
    """Deterministic init mimicking nn.Linear (uniform +/- 1/sqrt(fan_in))."""
    k1, k2, k3, k4 = jax.random.split(key, 4)
    bound1 = 1.0 / jnp.sqrt(jnp.float32(input_dim))
    bound2 = 1.0 / jnp.sqrt(jnp.float32(hidden))
    w1 = jax.random.uniform(k1, (hidden, input_dim), jnp.float32, -bound1, bound1)
    b1 = jax.random.uniform(k2, (hidden,), jnp.float32, -bound1, bound1)
    w2 = jax.random.uniform(k3, (output_dim, hidden), jnp.float32, -bound2, bound2)
    b2 = jax.random.uniform(k4, (output_dim,), jnp.float32, -bound2, bound2)
    return w1, b1, w2, b2


if __name__ == "__main__":
    key = jax.random.PRNGKey(0)
    k_x, k_p = jax.random.split(key)

    batch = 8
    input_dim = 64   # small stand-in for the 6400-dim Pong frame vector
    output_dim = 3   # small action space
    hidden = 200     # fixed by the module

    x = jax.random.normal(k_x, (batch, input_dim), jnp.float32)
    w1, b1, w2, b2 = init_params(k_p, input_dim, output_dim, hidden)

    out = policy_net_forward(x, w1, b1, w2, b2)
    out = jax.block_until_ready(out)
    assert out.shape == (batch, output_dim)

    # Reference with the same bf16-input / f32-accumulate matmul recipe.
    xb = x.astype(jnp.bfloat16)
    w1b = w1.T.astype(jnp.bfloat16)
    w2b = w2.T.astype(jnp.bfloat16)
    h_ref = jnp.maximum(
        jnp.dot(xb, w1b, preferred_element_type=jnp.float32) + b1, 0.0)
    logits_ref = jnp.dot(h_ref.astype(jnp.bfloat16), w2b,
                         preferred_element_type=jnp.float32) + b2
    ref = jax.nn.softmax(logits_ref, axis=-1)
    assert jnp.allclose(out, ref, atol=2e-3, rtol=2e-3)

    # Rows are valid probability distributions.
    assert jnp.allclose(jnp.sum(out, axis=-1), 1.0, atol=1e-5)

    # Loose sanity check vs. the full-f32 PyTorch-equivalent forward
    # (difference comes only from bf16 matmul inputs).
    h_f32 = jnp.maximum(x @ w1.T + b1, 0.0)
    ref_f32 = jax.nn.softmax(h_f32 @ w2.T + b2, axis=-1)
    assert jnp.allclose(out, ref_f32, atol=3e-2)

    print("KERNEL_OK")
</pallas_src>

<mosaic_0001>
module attributes {stable_mosaic.version = 11 : i64} {
  func.func @policy_net_kernel(%arg0: i32, %arg1: memref<8x64xf32, #tpu.memory_space<vmem>>, %arg2: memref<64x256xbf16, #tpu.memory_space<vmem>>, %arg3: memref<1x256xf32, #tpu.memory_space<vmem>>, %arg4: memref<256x128xbf16, #tpu.memory_space<vmem>>, %arg5: memref<1x128xf32, #tpu.memory_space<vmem>>, %arg6: memref<8x128xf32, #tpu.memory_space<vmem>>) attributes {dimension_semantics = [#tpu.dimension_semantics<parallel>], iteration_bounds = array<i64: 1>, scalar_prefetch = 0 : i64, scratch_operands = 0 : i64, tpu.core_type = #tpu.core_type<tc>, window_params = [{transform_indices = @transform_0, window_bounds = array<i64: 8, 64>}, {pipeline_mode = #tpu.pipeline_mode<synchronous>, transform_indices = @transform_1, window_bounds = array<i64: 64, 256>}, {pipeline_mode = #tpu.pipeline_mode<synchronous>, transform_indices = @transform_2, window_bounds = array<i64: 1, 256>}, {pipeline_mode = #tpu.pipeline_mode<synchronous>, transform_indices = @transform_3, window_bounds = array<i64: 256, 128>}, {pipeline_mode = #tpu.pipeline_mode<synchronous>, transform_indices = @transform_4, window_bounds = array<i64: 1, 128>}, {transform_indices = @transform_5, window_bounds = array<i64: 8, 128>}]} {
    %c0 = arith.constant 0 : index
    %c0_0 = arith.constant 0 : index
    %0 = vector.load %arg1[%c0, %c0_0] : memref<8x64xf32, #tpu.memory_space<vmem>>, vector<8x64xf32>
    %1 = arith.truncf %0 : vector<8x64xf32> to vector<8x64xbf16>
    %c0_1 = arith.constant 0 : index
    %c0_2 = arith.constant 0 : index
    %2 = vector.load %arg2[%c0_1, %c0_2] : memref<64x256xbf16, #tpu.memory_space<vmem>>, vector<64x256xbf16>
    %cst = arith.constant dense<0.000000e+00> : vector<8x256xf32>
    %3 = tpu.matmul %1, %2, %cst {dimension_numbers = #tpu.dot_dimension_numbers<[1], [0], [0], [1], [0, 0, 1, 1], [], []>} : vector<8x64xbf16>, vector<64x256xbf16>, vector<8x256xf32> -> vector<8x256xf32>
    %c0_3 = arith.constant 0 : index
    %c0_4 = arith.constant 0 : index
    %4 = vector.load %arg3[%c0_3, %c0_4] : memref<1x256xf32, #tpu.memory_space<vmem>>, vector<1x256xf32>
    %5 = vector.broadcast %4 : vector<1x256xf32> to vector<8x256xf32>
    %6 = arith.addf %3, %5 : vector<8x256xf32>
    %cst_5 = arith.constant 0.000000e+00 : f32
    %7 = vector.broadcast %cst_5 : f32 to vector<8x256xf32>
    %8 = arith.maximumf %6, %7 : vector<8x256xf32>
    %9 = arith.truncf %8 : vector<8x256xf32> to vector<8x256xbf16>
    %c0_6 = arith.constant 0 : index
    %c0_7 = arith.constant 0 : index
    %10 = vector.load %arg4[%c0_6, %c0_7] : memref<256x128xbf16, #tpu.memory_space<vmem>>, vector<256x128xbf16>
    %cst_8 = arith.constant dense<0.000000e+00> : vector<8x128xf32>
    %11 = tpu.matmul %9, %10, %cst_8 {dimension_numbers = #tpu.dot_dimension_numbers<[1], [0], [0], [1], [0, 0, 1, 1], [], []>} : vector<8x256xbf16>, vector<256x128xbf16>, vector<8x128xf32> -> vector<8x128xf32>
    %c0_9 = arith.constant 0 : index
    %c0_10 = arith.constant 0 : index
    %12 = vector.load %arg5[%c0_9, %c0_10] : memref<1x128xf32, #tpu.memory_space<vmem>>, vector<1x128xf32>
    %13 = vector.broadcast %12 : vector<1x128xf32> to vector<8x128xf32>
    %14 = arith.addf %11, %13 : vector<8x128xf32>
    %cst_11 = arith.constant dense<0xFF800000> : vector<8xf32>
    %15 = vector.multi_reduction <maximumf>, %14, %cst_11 [1] : vector<8x128xf32> to vector<8xf32>
    %16 = vector.shape_cast %15 : vector<8xf32> to vector<8x1xf32>
    %17 = vector.broadcast %16 : vector<8x1xf32> to vector<8x128xf32>
    %18 = arith.subf %14, %17 : vector<8x128xf32>
    %19 = math.exp %18 : vector<8x128xf32>
    %cst_12 = arith.constant dense<0.000000e+00> : vector<8xf32>
    %20 = vector.multi_reduction <add>, %19, %cst_12 [1] : vector<8x128xf32> to vector<8xf32>
    %21 = vector.shape_cast %20 : vector<8xf32> to vector<8x1xf32>
    %22 = tpu.reciprocal %21 : vector<8x1xf32> -> vector<8x1xf32>
    %23 = vector.broadcast %22 : vector<8x1xf32> to vector<8x128xf32>
    %24 = arith.mulf %19, %23 : vector<8x128xf32>
    %c0_13 = arith.constant 0 : index
    %c0_14 = arith.constant 0 : index
    %25 = vector.load %arg6[%c0_13, %c0_14] : memref<8x128xf32, #tpu.memory_space<vmem>>, vector<8x128xf32>
    tpu.vector_store %arg6[%c0_13, %c0_14], %24 {strides = array<i32>} : memref<8x128xf32, #tpu.memory_space<vmem>>, vector<8x128xf32>,
    return
  }
  func.func @transform_0(%arg0: i32) -> (i32, i32) {
    %c0_i32 = arith.constant 0 : i32
    %c0_i32_0 = arith.constant 0 : i32
    return %arg0, %c0_i32 : i32, i32
  }
  func.func @transform_1(%arg0: i32) -> (i32, i32) {
    %c0_i32 = arith.constant 0 : i32
    %c0_i32_0 = arith.constant 0 : i32
    %c0_i32_1 = arith.constant 0 : i32
    return %c0_i32, %c0_i32_0 : i32, i32
  }
  func.func @transform_2(%arg0: i32) -> (i32, i32) {
    %c0_i32 = arith.constant 0 : i32
    %c0_i32_0 = arith.constant 0 : i32
    %c0_i32_1 = arith.constant 0 : i32
    return %c0_i32, %c0_i32_0 : i32, i32
  }
  func.func @transform_3(%arg0: i32) -> (i32, i32) {
    %c0_i32 = arith.constant 0 : i32
    %c0_i32_0 = arith.constant 0 : i32
    %c0_i32_1 = arith.constant 0 : i32
    return %c0_i32, %c0_i32_0 : i32, i32
  }
  func.func @transform_4(%arg0: i32) -> (i32, i32) {
    %c0_i32 = arith.constant 0 : i32
    %c0_i32_0 = arith.constant 0 : i32
    %c0_i32_1 = arith.constant 0 : i32
    return %c0_i32, %c0_i32_0 : i32, i32
  }
  func.func @transform_5(%arg0: i32) -> (i32, i32) {
    %c0_i32 = arith.constant 0 : i32
    %c0_i32_0 = arith.constant 0 : i32
    return %arg0, %c0_i32 : i32, i32
  }
}

</mosaic_0001>

<bundles_post_ra>
// kernel: tpu_custom_call.1
= control target key start
LH: loop header
LB: loop body
LE: loop exit
PB: predicated region body
PF: predicated region fallthrough
CT: control target
= control target key end

     0   :  { %10 = vsyncpa [#allocation3], 0  ;;  %s649_s0 = inlined_call_operand.hbm [shape: f32[8,64], index: 0, kind: input, shape index: {}]   ;;  %s650_s1 = inlined_call_operand.hbm [shape: bf16[64,256], index: 1, kind: input, shape index: {}]   ;;  %s651_s2 = inlined_call_operand.vmem [shape: f32[1,256], index: 2, kind: input, shape index: {}]   ;;  %s652_s3 = inlined_call_operand.hbm [shape: bf16[256,128], index: 3, kind: input, shape index: {}]   ;;  %s653_s4 = inlined_call_operand.vmem [shape: f32[1,128], index: 4, kind: input, shape index: {}]   ;;  %s654_s5 = inlined_call_operand.hbm [shape: f32[8,128], index: 5, kind: output, shape index: {}]  }
   0x1   :  { %11 = vsyncpa [#allocation6], 0 }
   0x2   :  { %12 = vsyncpa [#allocation4], 0  ;;  %s556_s18 = smov [#allocation5]   ;;  %s462_s22 = scalar_lea.hbm %s650_s1, 1024 }
   0x3   :  { %s28_s19 = sshll.u32 %s556_s18, 4  ;;  %p463_p0 = scmp.ne.s32.totalorder %s650_s1, %s462_s22  ;;  %s29_s19 = int_to_ptr.vmem [resolvable:$true] %s28_s19 }
   0x4   :  { %p466_p1 = scmp.lt.u32.totalorder %s462_s22, %s650_s1 }
   0x6   :  { %p468_p2 = pnand %p466_p1, %p463_p0 }
   0x8   :  { %471 = shalt.err (!%p468_p2)
}
   0x9   :  { %s472_s27 = scalar_lea.vmem %s29_s19, 1024  ;;  %p477_p4 = scmp.lt.s32.totalorder %s29_s19, %s29_s19 }
   0xa   :  { %p473_p3 = scmp.ne.s32.totalorder %s29_s19, %s472_s27  ;;  %p478_p5 = scmp.lt.s32.totalorder %s472_s27, %s472_s27 }
   0xc   :  { %p479_p6 = por %p478_p5, %p477_p4 }
   0xe   :  { %p480_p7 = pnand %p479_p6, %p473_p3 }
  0x10   :  { %483 = shalt.err (!%p480_p7)
}
  0x11   :  { %s557_s28 = smov 128   ;;  %s558_s29 = smov 8  }
  0x12   :  { %34 = dma.hbm_to_vmem [thread:$0]  %s650_s1, 1024, %s29_s19, [#allocation6], %s557_s28, %s557_s28, %s558_s29  }
  0x13   :  { %s559_s7 = smov [#allocation2]   ;;  %s560_s9 = smov [#allocation7]  }
  0x14   :  { %s19_s8 = sshll.u32 %s559_s7, 4  ;;  %s42_s10 = sshll.u32 %s560_s9, 4  ;;  %s20_s8 = int_to_ptr.vmem [resolvable:$true] %s19_s8  ;;  %s43_s10 = int_to_ptr.vmem [resolvable:$true] %s42_s10 }
  0x15   :  { %s484_s13 = scalar_lea.hbm %s649_s0, 128 }
  0x16   :  { %p485_p8 = scmp.ne.s32.totalorder %s649_s0, %s484_s13  ;;  %p488_p9 = scmp.lt.u32.totalorder %s484_s13, %s649_s0 }
  0x18   :  { %p490_p10 = pnand %p488_p9, %p485_p8 }
  0x1a   :  { %493 = shalt.err (!%p490_p10)
}
  0x1b   :  { %s494_s1 = scalar_lea.vmem %s20_s8, 128  ;;  %p499_p12 = scmp.lt.s32.totalorder %s20_s8, %s20_s8 }
  0x1c   :  { %p495_p11 = scmp.ne.s32.totalorder %s20_s8, %s494_s1  ;;  %p500_p13 = scmp.lt.s32.totalorder %s494_s1, %s494_s1 }
  0x1e   :  { %p501_p0 = por %p500_p13, %p499_p12 }
  0x20   :  { %p502_p1 = pnand %p501_p0, %p495_p11 }
  0x22   :  { %505 = shalt.err (!%p502_p1)
}
  0x23   :  { %22 = dma.hbm_to_vmem [thread:$0]  %s649_s0, 128, %s20_s8, [#allocation3]  }
  0x24   :  { %s506_s22 = scalar_lea.hbm %s652_s3, 2048 }
  0x25   :  { %p507_p2 = scmp.ne.s32.totalorder %s652_s3, %s506_s22  ;;  %p510_p3 = scmp.lt.u32.totalorder %s506_s22, %s652_s3 }
  0x27   :  { %p512_p4 = pnand %p510_p3, %p507_p2 }
  0x29   :  { %515 = shalt.err (!%p512_p4)
}
  0x2a   :  { %s516_s27 = scalar_lea.vmem %s43_s10, 2048  ;;  %p521_p6 = scmp.lt.s32.totalorder %s43_s10, %s43_s10 }
  0x2b   :  { %p517_p5 = scmp.ne.s32.totalorder %s43_s10, %s516_s27  ;;  %p522_p7 = scmp.lt.s32.totalorder %s516_s27, %s516_s27 }
  0x2d   :  { %p523_p8 = por %p522_p7, %p521_p6 }
  0x2f   :  { %p524_p9 = pnand %p523_p8, %p517_p5 }
  0x31   :  { %527 = shalt.err (!%p524_p9)
}
  0x32   :  { %s561_s0 = smov 64   ;;  %s562_s28 = smov 4  }
  0x33   :  { %48 = dma.hbm_to_vmem [thread:$0]  %s652_s3, 2048, %s43_s10, [#allocation6], %s561_s0, %s561_s0, %s562_s28  }
  0x34   :  { %550 = dma.done.wait [#allocation3], 128  }
  0x35   :  { %551 = vsyncadd [#allocation3], 4294967168 }
  0x36   :  { %552 = dma.done.wait [#allocation6], 3072  }
  0x37   :  { %553 = vsyncadd [#allocation6], 4294964224  ;;  %v563_v0 = vmov 0   ;;  %v430_v1 = vld [vmem:[#allocation5 + $0x4] ss:$8 sps:$4 sm:$0xff]   ;;  %v446_v13 = vld [vmem:[#allocation7 + $0x50] sm:$0xff]   ;;  %v73_v27 = vlaneseq }
  0x38   :  { %159 = vmatprep.mubr.bf16.mxu0 %v563_v0  ;;  %v432_v2 = vld [vmem:[#allocation5] ss:$8 sps:$4 sm:$0xff]   ;;  %127 = vmatprep.subr.bf16.mxu0 %v430_v1  ;;  %v433_v3 = vld [vmem:[#allocation5 + $0x14] ss:$8 sps:$4 sm:$0xff]   ;;  %v435_v4 = vld [vmem:[#allocation5 + $0x10] ss:$8 sps:$4 sm:$0xff]  }
  0x39   :  { %128 = vmatpush1.bf16.msra.mxu0 %v432_v2  ;;  %v436_v5 = vld [vmem:[#allocation5 + $0x24] ss:$8 sps:$4 sm:$0xff]   ;;  %v438_v6 = vld [vmem:[#allocation5 + $0x20] ss:$8 sps:$4 sm:$0xff]   ;;  %v439_v7 = vld [vmem:[#allocation5 + $0x34] ss:$8 sps:$4 sm:$0xff]  }
  0x3a   :  { %129 = vmatprep.subr.bf16.mxu0 %v433_v3  ;;  %v442_v8 = vld [vmem:[#allocation7 + $0x40] sm:$0xff]   ;;  %v444_v10 = vld [vmem:[#allocation7 + $0x48] sm:$0xff]   ;;  %v441_v11 = vld [vmem:[#allocation5 + $0x30] ss:$8 sps:$4 sm:$0xff]   ;;  %vm123_vm0 = vcmask 523264   ;;  %v74_v28 = vshrl.u32 %v73_v27, 7 }
  0x3b   :  { %v443_v9 = vld [vmem:[#allocation7] sm:$0xff]   ;;  %399 = vmatprep.subr.bf16.mxu1 %v442_v8  ;;  %v445_v12 = vld [vmem:[#allocation7 + $0x8] sm:$0xff]   ;;  %v61_v14 = vld [vmem:[#allocation2] sm:$0xff] }
  0x3c   :  { %400 = vmatpush3.bf16.msra.mxu1 %v443_v9  ;;  %v447_v15 = vld [vmem:[#allocation7 + $0x10] sm:$0xff]   ;;  %v62_v16 = vpack.c.bf16 %v61_v14, %v61_v14  ;;  %v448_v17 = vld [vmem:[#allocation7 + $0x58] sm:$0xff]   ;;  %v450_v19 = vld [vmem:[#allocation7 + $0x60] sm:$0xff]   ;;  %v75_v29 = vsub.s32 0, %v74_v28  ;;  %v79_v31 = vsub.s32 1, %v74_v28 }
  0x3d   :  { %130 = vmatpush1.bf16.msra.mxu0 %v435_v4  ;;  %401 = vmatprep.subr.bf16.mxu1 %v444_v10  ;;  %v449_v18 = vld [vmem:[#allocation7 + $0x18] sm:$0xff]   ;;  %v451_v20 = vld [vmem:[#allocation7 + $0x20] sm:$0xff]   ;;  %v452_v21 = vld [vmem:[#allocation7 + $0x68] sm:$0xff]  }
  0x3e   :  { %131 = vmatprep.subr.bf16.mxu0 %v436_v5  ;;  %v453_v22 = vld [vmem:[#allocation7 + $0x28] sm:$0xff]   ;;  %v454_v23 = vld [vmem:[#allocation7 + $0x70] sm:$0xff]   ;;  %v456_v25 = vld [vmem:[#allocation7 + $0x78] sm:$0xff]  }
  0x3f   :  { %v455_v24 = vld [vmem:[#allocation7 + $0x30] sm:$0xff]   ;;  %v457_v26 = vld [vmem:[#allocation7 + $0x38] sm:$0xff]  }
  0x40   :  { %402 = vmatpush3.bf16.msra.mxu1 %v445_v12  ;;  %v71_v30 = vld [vmem:[%s651_s2] sm:$0x3]  ;;  %s564_s2 = smov [#allocation8]  }
  0x41   :  { %132 = vmatpush1.bf16.msra.mxu0 %v438_v6  ;;  %403 = vmatprep.subr.bf16.mxu1 %v446_v13  ;;  %v76_v32 = vrot.slane %v71_v30, %v75_v29  ;;  %v80_v33 = vrot.slane %v71_v30, %v79_v31  ;;  %v382_v46 = vld [vmem:[%s653_s4] ss:$0 sm:$0xff]  ;;  %s363_s9 = sshll.u32 %s564_s2, 4  ;;  %s364_s9 = int_to_ptr.vmem [resolvable:$true] %s363_s9 }
  0x42   :  { %133 = vmatprep.subr.bf16.mxu0 %v439_v7  ;;  %s528_s4 = scalar_lea.vmem %s364_s9, 128  ;;  %p533_p11 = scmp.lt.s32.totalorder %s364_s9, %s364_s9 }
  0x43   :  { %p529_p10 = scmp.ne.s32.totalorder %s364_s9, %s528_s4  ;;  %p534_p12 = scmp.lt.s32.totalorder %s528_s4, %s528_s4 }
  0x44   :  { %404 = vmatpush3.bf16.msra.mxu1 %v447_v15 }
  0x45   :  { %134 = vmatpush1.bf16.msra.mxu0 %v441_v11  ;;  %405 = vmatprep.subr.bf16.mxu1 %v448_v17  ;;  %p535_p13 = por %p534_p12, %p533_p11 }
  0x47   :  { %p536_p0 = pnand %p535_p13, %p529_p10 }
  0x48   :  { %381 = vmatmul.mubr.msk.bf16.vlgmr.msra.gmra.mrb[0].mxu0 %vm123_vm0, %v62_v16  ;;  %406 = vmatpush3.bf16.msra.mxu1 %v449_v18 }
  0x49   :  { %407 = vmatprep.subr.bf16.mxu1 %v450_v19 }
  0x4c   :  { %408 = vmatpush3.bf16.msra.mxu1 %v451_v20 }
  0x4d   :  { %409 = vmatprep.subr.bf16.mxu1 %v452_v21 }
  0x50   :  { %410 = vmatpush3.bf16.msra.mxu1 %v453_v22 }
  0x51   :  { %411 = vmatprep.subr.bf16.mxu1 %v454_v23 }
  0x54   :  { %412 = vmatpush3.bf16.msra.mxu1 %v455_v24 }
  0x55   :  { %413 = vmatprep.subr.bf16.mxu1 %v456_v25 }
  0x58   :  { %414 = vmatpush3.bf16.msra.mxu1 %v457_v26 }
 0x11b   :  { %v161_v34 = vpop.f32.mrb[0].mxu0 }
 0x11c   :  { %v162_v35 = vadd.f32 %v161_v34, %v76_v32  ;;  %v163_v36 = vpop.f32.mrb[1].mxu0 }
 0x11d   :  { %v164_v37 = vadd.f32 %v163_v36, %v80_v33  ;;  %v165_v38 = vpop.f32.mrb[2].mxu0 }
 0x11e   :  { %v168_v39 = vmax.f32 %v162_v35, 0.0  ;;  %v166_v40 = vpop.f32.mrb[3].mxu0 }
 0x11f   :  { %v169_v41 = vmax.f32 %v164_v37, 0.0 }
 0x120   :  { %v170_v43 = vpack.c.bf16 %v168_v39, %v168_v39 }
 0x121   :  { %v171_v42 = vpack.c.bf16 %v169_v41, %v169_v41 }
 0x123   :  { %339 = vmatprep.mubr.bf16.mxu1 %v171_v42 }
 0x124   :  { %340 = vmatmul.mubr.bf16.vlgmr.msra.gmra.mrb[0].mxu1 %v170_v43 }
 0x1f7   :  { %v415_v44 = vpop.f32.mrb[0].mxu1 }
 0x1f8   :  { %v416_v45 = vpop.f32.mrb[1].mxu1 }
 0x1f9   :  { %v417_v47 = vadd.f32 %v416_v45, %v415_v44  ;;  %v418_v48 = vpop.f32.mrb[2].mxu1 }
 0x1fa   :  { %v419_v49 = vpop.f32.mrb[3].mxu1 }
 0x1fb   :  { %v342_v50 = vadd.f32 %v417_v47, %v382_v46 }
 0x1fd   :  { %347 = vmax.xlane.f32.xlu0 %v342_v50 }
 0x28a   :  { %v348_v51 = vpop.xlane.xlu0 %347 }
 0x28b   :  { %v349_v52 = vsub.f32 %v342_v50, %v348_v51 }
 0x28d   :  { %v350_v53 = vmul.f32 1.442695, %v349_v52 }
 0x28f   :  { %458 = vpow2.f32 %v350_v53 }
 0x299   :  { %v459_v54 = vpop.eup %458 }
 0x29a   :  { %352 = vadd.xlane.f32.xlu0 %v459_v54 }
 0x327   :  { %v353_v55 = vpop.xlane.xlu0 %352 }
 0x328   :  { %460 = vrcp.f32 %v353_v55 }
 0x332   :  { %v461_v56 = vpop.eup %460 }
 0x333   :  { %v355_v57 = vmul.f32 %v461_v56, %v459_v54 }
 0x335   :  { %356 = vst [vmem:[#allocation8] sm:$0xff] %v355_v57 }
 0x336   :  { %539 = shalt.err (!%p536_p0)
}
 0x337   :  { %s540_s12 = scalar_lea.hbm %s654_s5, 128 }
 0x338   :  { %p541_p1 = scmp.ne.s32.totalorder %s654_s5, %s540_s12  ;;  %p544_p2 = scmp.lt.u32.totalorder %s540_s12, %s654_s5 }
 0x33a   :  { %p546_p3 = pnand %p544_p2, %p541_p1 }
 0x33c   :  { %549 = shalt.err (!%p546_p3)
}
 0x33d   :  { %366 = dma.vmem_to_hbm [thread:$0]  %s364_s9, 128, %s654_s5, [#allocation4]  }
 0x33e   :  { %554 = dma.done.wait [#allocation4], 128  }
 0x33f   :  { %555 = vsyncadd [#allocation4], 4294967168 }
 0x340   :  { %370 = vsyncpa [#allocation3], 1 }
 0x341   :  { %371 = vsyncpa [#allocation6], 1 }
 0x342   :  { %372 = vsyncpa [#allocation4], 1 }

</bundles_post_ra>
